<compile_context>
chip_gen: v6e
topology: v6e:2x2x1
jax: 0.10.0
libtpu: 0.0.40
codegen_flags: <defaults>
</compile_context>

<pallas_src>
import math

import jax
import jax.numpy as jnp
import numpy as np
from jax.experimental import pallas as pl
from jax.experimental.pallas import tpu as pltpu


def _round_up(x, m):
    return ((x + m - 1) // m) * m


def _cdiv(a, b):
    return (a + b - 1) // b


def _make_tcn_kernel(TL, K, pad, C_in, nLT, n_tail, needs_mask, halo_resident):
    if pad == 0:
        # Pointwise conv: one channel-mixing matmul + ReLU, no halo / scratch.
        def kernel(x_ref, w_ref, o_ref):
            acc = jnp.dot(x_ref[...], w_ref[0],
                          preferred_element_type=jnp.float32)
            o_ref[...] = jnp.maximum(acc, 0.0).astype(o_ref.dtype)
        return kernel

    def kernel(x_ref, halo_ref, w_ref, o_ref, win_ref):
        i = pl.program_id(1)
        x = x_ref[...]                                   # (TL, C_in), native dtype

        # Assemble the halo-extended window [left halo | tile | right halo] in
        # VMEM scratch; shifted sublane views feed one MXU matmul per tap.
        win_ref[pad:pad + TL, :] = x

        if needs_mask:
            # Only the LAST row tile can read rows past L through the stencil;
            # zero just its (statically known) tail rows instead of an
            # iota+compare+select over the full tile on every grid step.
            @pl.when(i == nLT - 1)
            def _():
                win_ref[pad + TL - n_tail:pad + TL, :] = jnp.zeros(
                    (n_tail, C_in), x.dtype)

        hl = halo_ref[i] if halo_resident else halo_ref[...]   # (2*pad, C_in)
        win_ref[0:pad, :] = hl[0:pad, :]
        win_ref[pad + TL:pad + TL + pad, :] = hl[pad:2 * pad, :]

        # Center tap straight from the register-resident tile (aligned, no
        # scratch reload) also seeds the f32 accumulator.  Remaining taps read
        # shifted views of the scratch window.
        acc = jnp.dot(x, w_ref[pad], preferred_element_type=jnp.float32)
        for t in range(K):
            if t == pad:
                continue
            acc = acc + jnp.dot(win_ref[t:t + TL, :], w_ref[t],
                                preferred_element_type=jnp.float32)

        o_ref[...] = jnp.maximum(acc, 0.0).astype(o_ref.dtype)

    return kernel


def tcn_forward(x, weight, *, tile_rows=None, lane_pad_out=True,
                halo_resident_bytes=4 << 20):
    """relu(conv1d(x, weight, padding=K//2, bias=None)) on (B, L, C) input.

    x: (B, L, C_in); weight: (C_out, C_in, K) (PyTorch Conv1d layout).
    Returns (B, L, C_out) in x.dtype.
    """
    B, L, C_in = x.shape
    C_out, C_in_w, K = weight.shape
    assert C_in_w == C_in, "weight in_channels mismatch"
    assert K % 2 == 1, "TCN uses padding=K//2; odd kernel sizes keep the length"
    pad = K // 2
    itemsize = jnp.dtype(x.dtype).itemsize
    sub = 16 if itemsize == 2 else 8

    # ---- Row-tile sizing: target ~1 MiB of activation traffic per grid step
    # (per-step overhead ~0.35us; tiny tiles never reach the HBM roofline), but
    # guarantee >= 2 grid steps so both v7x TensorCores get work.
    if tile_rows is None:
        TL = max(256, min(4096, (1 << 20) // max(1, C_in * itemsize)))
    else:
        TL = int(tile_rows)
    TL = _round_up(min(TL, _round_up(L, sub)), sub)
    while B * _cdiv(L, TL) < 2 and TL > sub:
        TL = _round_up(max(sub, TL // 2), sub)
    nLT = _cdiv(L, TL)
    needs_mask = pad > 0 and (L % TL) != 0
    n_tail = nLT * TL - L          # static garbage-row count of the last tile

    # ---- Lane-dense output: C_out < 128 would make every output store a
    # masked partial vst; pad the weight's C_out axis and slice back after.
    Cp = _round_up(C_out, 128) if lane_pad_out else C_out

    # ---- Weights: (C_out, C_in, K) -> (K, C_in, Cp), cast ONCE to the
    # activation dtype so the MXU runs at its native (e.g. bf16) rate and the
    # resident weight slab is as small as possible (matters on v7x's 64 MiB).
    w_taps = jnp.transpose(weight, (2, 1, 0)).astype(x.dtype)
    if Cp != C_out:
        w_taps = jnp.pad(w_taps, ((0, 0), (0, 0), (0, Cp - C_out)))

    # ---- Halo side input (the 2*pad boundary rows of each tile, zero at the
    # sequence ends), built with O(1) graph ops: one clipped gather + one mask.
    halo = None
    halo_resident = False
    if pad > 0:
        tiles = np.arange(nLT)[:, None]
        idx = np.concatenate(
            [tiles * TL - pad + np.arange(pad)[None, :],      # left halo rows
             (tiles + 1) * TL + np.arange(pad)[None, :]],     # right halo rows
            axis=1)                                            # (nLT, 2*pad)
        valid = (idx >= 0) & (idx < L)
        idx_c = np.clip(idx, 0, L - 1).reshape(-1)
        halo = jnp.take(x, jnp.asarray(idx_c), axis=1)
        halo = halo.reshape(B, nLT, 2 * pad, C_in)
        halo = jnp.where(jnp.asarray(valid)[None, :, :, None], halo,
                         jnp.zeros((), x.dtype))
        # Keep the per-batch halo resident in VMEM when small: one DMA per
        # batch instead of one descriptor-bound tiny DMA per grid step.
        halo_resident = nLT * 2 * pad * C_in * itemsize <= halo_resident_bytes

    kernel = _make_tcn_kernel(TL, K, pad, C_in, nLT, n_tail, needs_mask,
                              halo_resident)

    x_spec = pl.BlockSpec((None, TL, C_in), lambda b, i: (b, i, 0))
    # Constant index map -> weights stay resident across the whole grid.
    # (pipeline_mode=pl.Buffered(1) would drop the redundant second weight
    #  buffer on VMEM-tight configs; left at default for portability.)
    w_spec = pl.BlockSpec((K, C_in, Cp), lambda b, i: (0, 0, 0))
    out_spec = pl.BlockSpec((None, TL, Cp), lambda b, i: (b, i, 0))

    if pad > 0:
        if halo_resident:
            halo_spec = pl.BlockSpec((None, nLT, 2 * pad, C_in),
                                     lambda b, i: (b, 0, 0, 0))
        else:
            halo_spec = pl.BlockSpec((None, None, 2 * pad, C_in),
                                     lambda b, i: (b, i, 0, 0))
        in_specs = [x_spec, halo_spec, w_spec]
        operands = (x, halo, w_taps)
        scratch_shapes = [pltpu.VMEM((TL + 2 * pad, C_in), x.dtype)]
    else:
        in_specs = [x_spec, w_spec]
        operands = (x, w_taps)
        scratch_shapes = []

    # ---- Explicit VMEM budget so large-channel configs do not trip the
    # scoped default; double-buffered x/out + resident weights + window + halo.
    est = (2 * TL * C_in + 2 * TL * Cp + (TL + 2 * pad) * C_in
           + 2 * K * C_in * Cp) * itemsize
    if pad > 0:
        est += 2 * (nLT if halo_resident else 1) * 2 * pad * C_in * itemsize
    vmem_limit = int(min(128 * 1024 * 1024, max(32 * 1024 * 1024, 2 * est)))

    out = pl.pallas_call(
        kernel,
        out_shape=jax.ShapeDtypeStruct((B, L, Cp), x.dtype),
        grid_spec=pltpu.PrefetchScalarGridSpec(
            num_scalar_prefetch=0,
            grid=(B, nLT),
            in_specs=in_specs,
            out_specs=out_spec,
            scratch_shapes=scratch_shapes,
        ),
        compiler_params=pltpu.CompilerParams(
            dimension_semantics=("parallel", "parallel"),
            vmem_limit_bytes=vmem_limit),
    )(*operands)

    return out if Cp == C_out else out[:, :, :C_out]


def _xavier_uniform_conv1d(key, c_out, c_in, k):
    # Conv1d weight (c_out, c_in, k): fan_in = c_in*k, fan_out = c_out*k.
    bound = math.sqrt(6.0 / (c_in * k + c_out * k))
    return jax.random.uniform(key, (c_out, c_in, k), jnp.float32, -bound, bound)


def _reference(x, weight):
    # Pure-JAX reference mirroring the PyTorch forward (cross-correlation + ReLU).
    B, L, _ = x.shape
    C_out, _, K = weight.shape
    pad = K // 2
    xp = jnp.pad(x.astype(jnp.float32), ((0, 0), (pad, pad), (0, 0)))
    out = jnp.zeros((B, L, C_out), jnp.float32)
    for t in range(K):
        out = out + jnp.einsum("blc,oc->blo", xp[:, t:t + L, :],
                               weight[:, :, t].astype(jnp.float32))
    return jnp.maximum(out, 0.0).astype(x.dtype)


if __name__ == "__main__":
    key = jax.random.PRNGKey(0)

    cases = [
        dict(B=2, L=20, C_in=32, C_out=32, K=3),                       # auto tile
        dict(B=2, L=20, C_in=32, C_out=32, K=3, tile_rows=8),          # multi-tile + halos
        dict(B=2, L=20, C_in=32, C_out=32, K=3, tile_rows=8,
             halo_resident_bytes=0),                                   # per-step halo DMA
        dict(B=1, L=33, C_in=16, C_out=128, K=5),                      # no lane pad, TC split
        dict(B=2, L=16, C_in=32, C_out=32, K=1),                       # pointwise (pad == 0)
    ]

    for n, c in enumerate(cases):
        k1, k2 = jax.random.split(jax.random.fold_in(key, n))
        B, L, C_in, C_out, K = c["B"], c["L"], c["C_in"], c["C_out"], c["K"]
        kwargs = {k: v for k, v in c.items()
                  if k not in ("B", "L", "C_in", "C_out", "K")}

        x = jax.random.normal(k1, (B, L, C_in), jnp.float32)
        w = _xavier_uniform_conv1d(k2, C_out, C_in, K)

        out = jax.block_until_ready(tcn_forward(x, w, **kwargs))
        ref = _reference(x, w)
        assert out.shape == ref.shape, f"shape mismatch in case {n}"
        assert jnp.allclose(out, ref, atol=1e-4, rtol=1e-4), f"mismatch in case {n}"

    print("KERNEL_OK")
</pallas_src>

<mosaic_0001>
module attributes {stable_mosaic.version = 11 : i64} {
  func.func @kernel(%arg0: i32, %arg1: i32, %arg2: memref<1x24x32xf32, #tpu.memory_space<vmem>>, %arg3: memref<1x1x2x32xf32, #tpu.memory_space<vmem>>, %arg4: memref<3x32x128xf32, #tpu.memory_space<vmem>>, %arg5: memref<1x24x128xf32, #tpu.memory_space<vmem>>, %arg6: memref<26x32xf32, #tpu.memory_space<vmem>>) attributes {dimension_semantics = [#tpu.dimension_semantics<parallel>, #tpu.dimension_semantics<parallel>], iteration_bounds = array<i64: 2, 1>, scalar_prefetch = 0 : i64, scratch_operands = 1 : i64, tpu.core_type = #tpu.core_type<tc>, window_params = [{transform_indices = @transform_0, window_bounds = array<i64: 1, 24, 32>}, {transform_indices = @transform_1, window_bounds = array<i64: 1, 1, 2, 32>}, {pipeline_mode = #tpu.pipeline_mode<synchronous>, transform_indices = @transform_2, window_bounds = array<i64: 3, 32, 128>}, {transform_indices = @transform_3, window_bounds = array<i64: 1, 24, 128>}]} {
    %c0 = arith.constant 0 : index
    %c0_0 = arith.constant 0 : index
    %c0_1 = arith.constant 0 : index
    %0 = vector.load %arg2[%c0, %c0_0, %c0_1] : memref<1x24x32xf32, #tpu.memory_space<vmem>>, vector<1x24x32xf32>
    %1 = vector.shape_cast %0 : vector<1x24x32xf32> to vector<24x32xf32>
    %c1 = arith.constant 1 : index
    %c0_2 = arith.constant 0 : index
    %2 = vector.load %arg6[%c1, %c0_2] : memref<26x32xf32, #tpu.memory_space<vmem>>, vector<24x32xf32>
    tpu.vector_store %arg6[%c1, %c0_2], %1 {strides = array<i32>} : memref<26x32xf32, #tpu.memory_space<vmem>>, vector<24x32xf32>,
    %c0_i32 = arith.constant 0 : i32
    %3 = arith.cmpi eq, %arg1, %c0_i32 : i32
    %4 = arith.extui %3 : i1 to i32
    %c0_i32_3 = arith.constant 0 : i32
    %5 = arith.cmpi ne, %4, %c0_i32_3 : i32
    scf.if %5 {
      %cst_28 = arith.constant 0.000000e+00 : f32
      %31 = vector.broadcast %cst_28 : f32 to vector<4x32xf32>
      %c21 = arith.constant 21 : index
      %c0_29 = arith.constant 0 : index
      %32 = vector.load %arg6[%c21, %c0_29] : memref<26x32xf32, #tpu.memory_space<vmem>>, vector<4x32xf32>
      tpu.vector_store %arg6[%c21, %c0_29], %31 {strides = array<i32>} : memref<26x32xf32, #tpu.memory_space<vmem>>, vector<4x32xf32>,
    } else {
    }
    %c0_4 = arith.constant 0 : index
    %6 = arith.index_cast %arg1 : i32 to index
    %c0_5 = arith.constant 0 : index
    %c0_6 = arith.constant 0 : index
    %7 = vector.load %arg3[%c0_4, %6, %c0_5, %c0_6] : memref<1x1x2x32xf32, #tpu.memory_space<vmem>>, vector<1x1x2x32xf32>
    %8 = vector.shape_cast %7 : vector<1x1x2x32xf32> to vector<2x32xf32>
    %9 = vector.extract_strided_slice %8 {offsets = [0, 0], sizes = [1, 32], strides = [1, 1]} : vector<2x32xf32> to vector<1x32xf32>
    %c0_7 = arith.constant 0 : index
    %c0_8 = arith.constant 0 : index
    %10 = vector.load %arg6[%c0_7, %c0_8] : memref<26x32xf32, #tpu.memory_space<vmem>>, vector<1x32xf32>
    tpu.vector_store %arg6[%c0_7, %c0_8], %9 {strides = array<i32>} : memref<26x32xf32, #tpu.memory_space<vmem>>, vector<1x32xf32>,
    %11 = vector.extract_strided_slice %8 {offsets = [1, 0], sizes = [1, 32], strides = [1, 1]} : vector<2x32xf32> to vector<1x32xf32>
    %c25 = arith.constant 25 : index
    %c0_9 = arith.constant 0 : index
    %12 = vector.load %arg6[%c25, %c0_9] : memref<26x32xf32, #tpu.memory_space<vmem>>, vector<1x32xf32>
    tpu.vector_store %arg6[%c25, %c0_9], %11 {strides = array<i32>} : memref<26x32xf32, #tpu.memory_space<vmem>>, vector<1x32xf32>,
    %c1_10 = arith.constant 1 : index
    %c0_11 = arith.constant 0 : index
    %c0_12 = arith.constant 0 : index
    %13 = vector.load %arg4[%c1_10, %c0_11, %c0_12] : memref<3x32x128xf32, #tpu.memory_space<vmem>>, vector<1x32x128xf32>
    %14 = vector.shape_cast %13 : vector<1x32x128xf32> to vector<32x128xf32>
    %cst = arith.constant dense<0.000000e+00> : vector<24x128xf32>
    %15 = tpu.matmul %1, %14, %cst {dimension_numbers = #tpu.dot_dimension_numbers<[1], [0], [0], [1], [0, 0, 1, 1], [], []>} : vector<24x32xf32>, vector<32x128xf32>, vector<24x128xf32> -> vector<24x128xf32>
    %c0_13 = arith.constant 0 : index
    %c0_14 = arith.constant 0 : index
    %16 = vector.load %arg6[%c0_13, %c0_14] : memref<26x32xf32, #tpu.memory_space<vmem>>, vector<24x32xf32>
    %c0_15 = arith.constant 0 : index
    %c0_16 = arith.constant 0 : index
    %c0_17 = arith.constant 0 : index
    %17 = vector.load %arg4[%c0_15, %c0_16, %c0_17] : memref<3x32x128xf32, #tpu.memory_space<vmem>>, vector<1x32x128xf32>
    %18 = vector.shape_cast %17 : vector<1x32x128xf32> to vector<32x128xf32>
    %cst_18 = arith.constant dense<0.000000e+00> : vector<24x128xf32>
    %19 = tpu.matmul %16, %18, %cst_18 {dimension_numbers = #tpu.dot_dimension_numbers<[1], [0], [0], [1], [0, 0, 1, 1], [], []>} : vector<24x32xf32>, vector<32x128xf32>, vector<24x128xf32> -> vector<24x128xf32>
    %20 = arith.addf %15, %19 : vector<24x128xf32>
    %c2 = arith.constant 2 : index
    %c0_19 = arith.constant 0 : index
    %21 = vector.load %arg6[%c2, %c0_19] : memref<26x32xf32, #tpu.memory_space<vmem>>, vector<24x32xf32>
    %c2_20 = arith.constant 2 : index
    %c0_21 = arith.constant 0 : index
    %c0_22 = arith.constant 0 : index
    %22 = vector.load %arg4[%c2_20, %c0_21, %c0_22] : memref<3x32x128xf32, #tpu.memory_space<vmem>>, vector<1x32x128xf32>
    %23 = vector.shape_cast %22 : vector<1x32x128xf32> to vector<32x128xf32>
    %cst_23 = arith.constant dense<0.000000e+00> : vector<24x128xf32>
    %24 = tpu.matmul %21, %23, %cst_23 {dimension_numbers = #tpu.dot_dimension_numbers<[1], [0], [0], [1], [0, 0, 1, 1], [], []>} : vector<24x32xf32>, vector<32x128xf32>, vector<24x128xf32> -> vector<24x128xf32>
    %25 = arith.addf %20, %24 : vector<24x128xf32>
    %cst_24 = arith.constant 0.000000e+00 : f32
    %26 = vector.broadcast %cst_24 : f32 to vector<24x128xf32>
    %27 = arith.maximumf %25, %26 : vector<24x128xf32>
    %c0_25 = arith.constant 0 : index
    %c0_26 = arith.constant 0 : index
    %c0_27 = arith.constant 0 : index
    %28 = vector.load %arg5[%c0_25, %c0_26, %c0_27] : memref<1x24x128xf32, #tpu.memory_space<vmem>>, vector<1x24x128xf32>
    %29 = vector.shape_cast %28 : vector<1x24x128xf32> to vector<24x128xf32>
    %30 = vector.shape_cast %27 : vector<24x128xf32> to vector<1x24x128xf32>
    tpu.vector_store %arg5[%c0_25, %c0_26, %c0_27], %30 {strides = array<i32>} : memref<1x24x128xf32, #tpu.memory_space<vmem>>, vector<1x24x128xf32>,
    return
  }
  func.func @transform_0(%arg0: i32, %arg1: i32) -> (i32, i32, i32) {
    %c0_i32 = arith.constant 0 : i32
    %c0_i32_0 = arith.constant 0 : i32
    return %arg0, %arg1, %c0_i32 : i32, i32, i32
  }
  func.func @transform_1(%arg0: i32, %arg1: i32) -> (i32, i32, i32, i32) {
    %c0_i32 = arith.constant 0 : i32
    %c0_i32_0 = arith.constant 0 : i32
    %c0_i32_1 = arith.constant 0 : i32
    %c0_i32_2 = arith.constant 0 : i32
    return %arg0, %c0_i32, %c0_i32_0, %c0_i32_1 : i32, i32, i32, i32
  }
  func.func @transform_2(%arg0: i32, %arg1: i32) -> (i32, i32, i32) {
    %c0_i32 = arith.constant 0 : i32
    %c0_i32_0 = arith.constant 0 : i32
    %c0_i32_1 = arith.constant 0 : i32
    %c0_i32_2 = arith.constant 0 : i32
    return %c0_i32, %c0_i32_0, %c0_i32_1 : i32, i32, i32
  }
  func.func @transform_3(%arg0: i32, %arg1: i32) -> (i32, i32, i32) {
    %c0_i32 = arith.constant 0 : i32
    %c0_i32_0 = arith.constant 0 : i32
    return %arg0, %arg1, %c0_i32 : i32, i32, i32
  }
}

</mosaic_0001>

<bundles_post_ra>
// kernel: tpu_custom_call.1
= control target key start
LH: loop header
LB: loop body
LE: loop exit
PB: predicated region body
PF: predicated region fallthrough
CT: control target
= control target key end

     0   :  { %8 = vsyncpa [#allocation4], 0  ;;  %s891_s12 = smov 0   ;;  %s893_s13 = smov 0   ;;  %s1009_s0 = inlined_call_operand.vmem [shape: f32[2,20,32], index: 0, kind: input, shape index: {}]   ;;  %s1010_s1 = inlined_call_operand.vmem [shape: f32[2,1,2,32], index: 1, kind: input, shape index: {}]   ;;  %s1011_s2 = inlined_call_operand.hbm [shape: f32[3,32,128], index: 2, kind: input, shape index: {}]   ;;  %s1012_s3 = inlined_call_operand.vmem [shape: f32[2,20,128], index: 3, kind: output, shape index: {}]  }
   0x1   :  { %s895_s14 = smov 0  }
   0x2 LB: > { %s671_s15 = sadd.s32 4294967295, %s864_s14   ;;  %s26_s16 = sadd.s32 1, %s860_s13  ;;  %s864_s14 = sphi %s895_s14, %s14_s14   ;;  %s860_s13 = sphi %s893_s13, %s1016_s13   ;;  %s856_s12 = sphi %s891_s12, %s1015_s12  }
   0x3   : > { %p28_p0 = scmp.ge.s32.totalorder %s26_s16, 2  ;;  %p673_p1 = scmp.ge.s32.totalorder %s864_s14, 1 }
   0x4   : > { %p134_p2 = scmp.lt.s32.totalorder %s864_s14, 3  ;;  %p916_p4 = scmp.eq.s32.totalorder %s671_s15, 0 }
   0x5   : > { %s1018_s16 = smov (%p28_p0, %s26_s16), 0  ;;  %s866_s19 = smov [#allocation3]  }
   0x6   : > { %p912_p3 = pnand %p673_p1, %p134_p2  ;;  %s146_s20 = sshll.u32 %s866_s19, 4  ;;  %s147_s20 = int_to_ptr.vmem [resolvable:$true] %s146_s20 }
   0x7   : > { %s823_s21 = scalar_lea.vmem %s147_s20, 1536  ;;  %p831_p11 = scmp.lt.s32.totalorder %s147_s20, %s147_s20 }
   0x8   : > { %p777_p5 = pneg %p912_p3  ;;  %p824_p8 = scmp.ne.s32.totalorder %s147_s20, %s823_s21 }
   0x9   : > { %p832_p12 = scmp.lt.s32.totalorder %s823_s21, %s823_s21 }
   0xa   : > { %p778_p6 = pnand %p916_p4, %p777_p5 }
   0xb   : > { %p833_p13 = por %p832_p12, %p831_p11 }
   0xc   : > { %p814_p7 = pneg %p778_p6 }
   0xe   : > { %p826_p9 = pnand %p824_p8, %p814_p7 }
  0x10   : > { %p827_p10 = pneg %p826_p9 }
  0x12   : > { %p834_p0 = pnand %p833_p13, %p827_p10 }
  0x14   : > { %837 = shalt.err (!%p834_p0)
}
  0x15   : > { %s867_s22 = smov 128   ;;  %s868_s23 = smov 8  }
  0x16   : > { %780 = dma.hbm_to_vmem [thread:$0]  (!%p778_p6), %s1011_s2, 1536, %s147_s20, [#allocation4], %s867_s22, %s867_s22, %s868_s23  }
  0x17   : > { %182 = sbr.rel (%p912_p3) target bundleno = 263 (0x107), region = 32 }
  0x1c   : > { %851 = dma.done.wait (%p916_p4), [#allocation4], 1536  }
  0x1d   : > { %853 = vsyncadd (%p916_p4), [#allocation4], 4294965760  ;;  %p219_p1 = scmp.lt.s32.totalorder %s856_s12, 1  ;;  %v869_v0 = vmov 0.0   ;;  %vm870_vm0 = vmmov 0   ;;  %vm245_vm1 = vcmask 261120  }
  0x1e   : > { %713 = vmatprep.subr.mxu0 %v869_v0  ;;  %764 = vmatprep.subr.mxu1 %v869_v0  ;;  %vm258_vm2 = vcmask 253952   ;;  %vm260_vm3 = vcmask 254977   ;;  %v273_v1 = vld [vmem:[#allocation3 + $0x18] sm:$0xff]  ;;  %v272_v2 = vld [vmem:[#allocation3 + $0x10] sm:$0xff]  ;;  %vm253_vm4 = vcmask 257024   ;;  %v271_v5 = vld [vmem:[#allocation3 + $0x8] sm:$0xff] }
  0x1f   : > { %721 = vmatprep.mubr.msk.f32.mxu0 %vm870_vm0, %v869_v0  ;;  %s1020_s12 = smov (!%p219_p1, %s856_s12), 1  ;;  %727 = vmatprep.mubr.msk.f32.mxu1 %vm870_vm0, %v869_v0  ;;  %v270_v8 = vld [vmem:[#allocation3] sm:$0xff]  ;;  %v459_v9 = vld [vmem:[#allocation3 + $0x58] sm:$0xff]  ;;  %v458_v12 = vld [vmem:[#allocation3 + $0x50] sm:$0xff] }
  0x20   : > { %s772_s26 = smul.u32 24, %s1020_s12  ;;  %s679_s27 = sshll.u32 %s1020_s12, 1  ;;  %714 = vmatpush3.msra.mxu0 %v273_v1  ;;  %768 = vmatpush3.msra.mxu1 %v273_v1  ;;  %v266_v11 = vld [vmem:[#allocation3 + $0x38] sm:$0xff]  ;;  %v265_v15 = vld [vmem:[#allocation3 + $0x30] sm:$0xff]  ;;  %v457_v16 = vld [vmem:[#allocation3 + $0x48] sm:$0xff] }
  0x21   : > { %s231_s30 = scalar_lea.vmem %s1010_s1, %s679_s27  ;;  %715 = vmatprep.subr.mxu0 %v869_v0  ;;  %765 = vmatprep.subr.mxu1 %v869_v0  ;;  %v264_v17 = vld [vmem:[#allocation3 + $0x28] sm:$0xff]  ;;  %v263_v18 = vld [vmem:[#allocation3 + $0x20] sm:$0xff] }
  0x22   : > { %s226_s6 = scalar_lea.vmem %s1009_s0, %s772_s26  ;;  %v257_v4 = vld [vmem:[%s231_s30] sm:$0x3]  ;;  %716 = vmatpush3.msra.mxu0 %v272_v2  ;;  %769 = vmatpush3.msra.mxu1 %v272_v2  ;;  %s240_s9 = scalar_lea.vmem %s1012_s3, %s772_s26 }
  0x23   : > { %v242_v3 = vld [vmem:[%s226_s6] sm:$0xff]  ;;  %259 = vst.msk [vmem:[#allocation2] sm:$0x1] %vm258_vm2, %v257_v4  ;;  %v243_v6 = vld [vmem:[%s226_s6 + $0x8] sm:$0xff]  ;;  %v244_v7 = vld [vmem:[%s226_s6 + $0x10] sm:$0xff]  ;;  %717 = vmatprep.subr.mxu0 %v869_v0  ;;  %766 = vmatprep.subr.mxu1 %v869_v0 }
  0x24   : > { %246 = vst.msk [vmem:[#allocation2 + $0x1] sm:$0xff] %vm245_vm1, %v242_v3  ;;  %247 = vst.msk [vmem:[#allocation2 + $0x9] sm:$0xff] %vm245_vm1, %v243_v6  ;;  %718 = vmatpush3.msra.mxu0 %v271_v5  ;;  %770 = vmatpush3.msra.mxu1 %v271_v5  ;;  %v456_v19 = vld [vmem:[#allocation3 + $0x40] sm:$0xff] }
  0x25   : > { %261 = vst.msk [vmem:[#allocation2 + $0x18] sm:$0x2] %vm260_vm3, %v257_v4  ;;  %719 = vmatprep.subr.mxu0 %v869_v0  ;;  %767 = vmatprep.subr.mxu1 %v869_v0 }
  0x26   : > { %248 = vst.msk [vmem:[#allocation2 + $0x11] sm:$0xff] %vm245_vm1, %v244_v7  ;;  %720 = vmatpush3.msra.mxu0 %v270_v8  ;;  %771 = vmatpush3.msra.mxu1 %v270_v8 }
  0x27   : > { %254 = vst.msk [vmem:[#allocation2 + $0x15] sm:$0xf] %vm253_vm4, %v869_v0  ;;  %730 = vmatprep.subr.mxu1 %v869_v0  ;;  %747 = vmatprep.subr.mxu0 %v869_v0 }
  0x2b   : > { %v267_v10 = vld [vmem:[#allocation2] sm:$0xff]  ;;  %v268_v14 = vld [vmem:[#allocation2 + $0x8] sm:$0xff] }
  0x2c   : > { %722 = vmatmul.mubr.msk.f32.vlgmr.msra.gmra.mxu0 %vm245_vm1, %v267_v10  ;;  %v452_v20 = vld [vmem:[#allocation2 + $0x2] sm:$0xff] }
  0x2d   : > { %748 = vmatpush3.msra.mxu0 %v459_v9  ;;  %724 = vmatprep.mubr.msk.f32.mxu0 %vm870_vm0, %v869_v0  ;;  %v453_v21 = vld [vmem:[#allocation2 + $0xa] sm:$0xff] }
  0x2e   : > { %v269_v13 = vld [vmem:[#allocation2 + $0x10] sm:$0xff]  ;;  %749 = vmatprep.subr.mxu0 %v869_v0 }
  0x2f   : > { %728 = vmatmul.mubr.msk.f32.vlgmr.msra.gmra.mxu1 %vm245_vm1, %v269_v13  ;;  %750 = vmatpush3.msra.mxu0 %v458_v12  ;;  %v454_v22 = vld [vmem:[#allocation2 + $0x12] sm:$0xff] }
  0x30   : > { %731 = vmatpush3.msra.mxu1 %v266_v11  ;;  %725 = vmatmul.mubr.msk.f32.gmra.mxu0 %vm245_vm1, %v268_v14 }
  0x31   : > { %732 = vmatprep.subr.mxu1 %v869_v0  ;;  %751 = vmatprep.subr.mxu0 %v869_v0 }
  0x32   : > { %733 = vmatpush3.msra.mxu1 %v265_v15  ;;  %752 = vmatpush3.msra.mxu0 %v457_v16 }
  0x33   : > { %734 = vmatprep.subr.mxu1 %v869_v0  ;;  %753 = vmatprep.subr.mxu0 %v869_v0 }
  0x34   : > { %735 = vmatpush3.msra.mxu1 %v264_v17  ;;  %738 = vmatprep.mubr.msk.f32.mxu1 %vm870_vm0, %v869_v0 }
  0x35   : > { %736 = vmatprep.subr.mxu1 %v869_v0  ;;  %754 = vmatpush3.msra.mxu0 %v456_v19 }
  0x36   : > { %737 = vmatpush3.msra.mxu1 %v263_v18  ;;  %755 = vmatprep.mubr.msk.f32.mxu0 %vm870_vm0, %v869_v0 }
  0x37   : > { %739 = vmatmul.mubr.msk.f32.vlgmr.msra.gmra.mxu1 %vm245_vm1, %v242_v3  ;;  %756 = vmatmul.mubr.msk.f32.vlgmr.msra.gmra.mxu0 %vm245_vm1, %v452_v20 }
  0x38   : > { %741 = vmatprep.mubr.msk.f32.mxu1 %vm870_vm0, %v869_v0  ;;  %758 = vmatprep.mubr.msk.f32.mxu0 %vm870_vm0, %v869_v0 }
  0x3b   : > { %742 = vmatmul.mubr.msk.f32.gmra.mxu1 %vm245_vm1, %v243_v6  ;;  %759 = vmatmul.mubr.msk.f32.gmra.mxu0 %vm245_vm1, %v453_v21 }
  0x3c   : > { %744 = vmatprep.mubr.msk.f32.mxu1 %vm870_vm0, %v869_v0  ;;  %761 = vmatprep.mubr.msk.f32.mxu0 %vm870_vm0, %v869_v0 }
  0x3f   : > { %745 = vmatmul.mubr.msk.f32.gmra.mxu1 %vm245_vm1, %v244_v7  ;;  %762 = vmatmul.mubr.msk.f32.gmra.mxu0 %vm245_vm1, %v454_v22 }
  0xec   : > { %v349_v23 = vpop.f32.mrf.mxu0 }
  0xee   : > { %v723_v25 = vpop.f32.mrf.mxu0 }
  0xef   : > { %v359_v24 = vpop.f32.mrf.mxu1 }
  0xf0   : > { %v354_v27 = vpop.f32.mrf.mxu0 }
  0xf1   : > { %v729_v26 = vpop.f32.mrf.mxu1 }
  0xf2   : > { %v726_v28 = vpop.f32.mrf.mxu0 }
  0xf7   : > { %v438_v29 = vpop.f32.mrf.mxu1  ;;  %v535_v31 = vpop.f32.mrf.mxu0 }
  0xf8   : > { %v439_v30 = vadd.f32 %v438_v29, %v349_v23 }
  0xf9   : > { %v740_v32 = vpop.f32.mrf.mxu1  ;;  %v757_v34 = vpop.f32.mrf.mxu0 }
  0xfa   : > { %v549_v33 = vadd.f32 %v535_v31, %v439_v30 }
  0xfb   : > { %v443_v35 = vpop.f32.mrf.mxu1  ;;  %v540_v38 = vpop.f32.mrf.mxu0 }
  0xfc   : > { %v552_v36 = vmax.f32 %v549_v33, 0.0  ;;  %v444_v37 = vadd.f32 %v443_v35, %v354_v27 }
  0xfd   : > { %v743_v39 = vpop.f32.mrf.mxu1  ;;  %v760_v41 = vpop.f32.mrf.mxu0 }
  0xfe   : > { %555 = vst [vmem:[%s240_s9] sm:$0xff] %v552_v36  ;;  %v550_v40 = vadd.f32 %v540_v38, %v444_v37 }
  0xff   : > { %v448_v42 = vpop.f32.mrf.mxu1  ;;  %v545_v45 = vpop.f32.mrf.mxu0 }
 0x100   : > { %v553_v43 = vmax.f32 %v550_v40, 0.0  ;;  %v449_v44 = vadd.f32 %v448_v42, %v359_v24 }
 0x101   : > { %v746_v46 = vpop.f32.mrf.mxu1  ;;  %v763_v48 = vpop.f32.mrf.mxu0 }
 0x102   : > { %556 = vst [vmem:[%s240_s9 + $0x8] sm:$0xff] %v553_v43  ;;  %v551_v47 = vadd.f32 %v545_v45, %v449_v44 }
 0x104   : > { %v554_v49 = vmax.f32 %v551_v47, 0.0 }
 0x106   : > { %557 = vst [vmem:[%s240_s9 + $0x10] sm:$0xff] %v554_v49 }
 0x107 PF: > { %s14_s14 = sadd.s32 1, %s864_s14   ;;  %s1015_s12 = smov %s860_s13 }
 0x108   : > { %p11_p2 = scmp.ge.s32.totalorder %s14_s14, 4   ;;  %s1016_s13 = smov %s1018_s16 }
 0x10a   :  { %13 = sbr.rel (!%p11_p2) target bundleno = 2 (0x2), region = 77 }
 0x10f   :  { %588 = vsyncpa [#allocation4], 1 }
 0x110   :  { %590 = vsyncpa [#allocation4 + $0x1], 1 }

</bundles_post_ra>
